<compile_context>
chip_gen: v5e
topology: v5e:2x2
jax: 0.10.0
libtpu: 0.0.40
codegen_flags: <defaults>
</compile_context>

<pallas_src>
import jax
import jax.numpy as jnp
from jax.experimental import pallas as pl
from jax.experimental.pallas import tpu as pltpu


# ---------------------------------------------------------------------------
# Kernel
# ---------------------------------------------------------------------------
def mlp_kernel(x_ref, w1_ref, b1_ref, w2_ref, b2_ref, w3_ref, b3_ref, out_ref):
    """One (TM, D_in) batch tile through the fused 3-layer MLP.

    Weights arrive pre-cast to the MXU dtype; biases are f32 and the
    bias-add / ReLU epilogue stays in f32 (MXU accumulation is f32 via
    preferred_element_type).
    """
    mxu_dtype = w1_ref.dtype
    x = x_ref[...].astype(mxu_dtype)

    # Layer 1: fc1 + ReLU
    h1 = jnp.dot(x, w1_ref[...], preferred_element_type=jnp.float32)
    h1 = jnp.maximum(h1 + b1_ref[...], 0.0)

    # Layer 2: fc2 + ReLU
    h2 = jnp.dot(h1.astype(mxu_dtype), w2_ref[...],
                 preferred_element_type=jnp.float32)
    h2 = jnp.maximum(h2 + b2_ref[...], 0.0)

    # Layer 3: fc3 (no activation)
    y = jnp.dot(h2.astype(mxu_dtype), w3_ref[...],
                preferred_element_type=jnp.float32)
    y = y + b3_ref[...]

    out_ref[...] = y.astype(out_ref.dtype)


# ---------------------------------------------------------------------------
# Helpers
# ---------------------------------------------------------------------------
def _round_up(x: int, m: int) -> int:
    return ((x + m - 1) // m) * m


def _round_down(x: int, m: int) -> int:
    return (x // m) * m


def _cdiv(a: int, b: int) -> int:
    return -(-a // b)


def _pad_to(a, shape):
    pads = [(0, t - s) for s, t in zip(a.shape, shape)]
    if all(p == (0, 0) for p in pads):
        return a
    return jnp.pad(a, pads)


def _vmem_capacity_bytes(default=64 * 1024 * 1024):
    """Physical VMEM per core; conservative 64 MiB (v7x) fallback."""
    try:
        info = pltpu.get_tpu_info()
        return int(getattr(info, "vmem_capacity_bytes", default))
    except Exception:
        return default


# ---------------------------------------------------------------------------
# One-time parameter preparation (pad + cast OUTSIDE the per-forward path)
# ---------------------------------------------------------------------------
def prepare_params(w1, b1, w2, b2, w3, b3, *, mxu_dtype=jnp.bfloat16):
    """Pad params to 128-multiples and cast weights to the MXU dtype once.

    Weights are stored [in, out] (transposed vs. torch's [out, in]).  Biases
    stay f32 for the f32 epilogue.  Zero padding is inert through
    bias-add + ReLU.
    """
    d_in, h1 = w1.shape
    h2 = w2.shape[1]
    d_out = w3.shape[1]
    d_in_p, h1_p, h2_p, d_out_p = (_round_up(d, 128)
                                   for d in (d_in, h1, h2, d_out))
    return dict(
        d_in=d_in, d_out=d_out,
        w1=_pad_to(w1, (d_in_p, h1_p)).astype(mxu_dtype),
        b1=_pad_to(b1.reshape(1, -1), (1, h1_p)).astype(jnp.float32),
        w2=_pad_to(w2, (h1_p, h2_p)).astype(mxu_dtype),
        b2=_pad_to(b2.reshape(1, -1), (1, h2_p)).astype(jnp.float32),
        w3=_pad_to(w3, (h2_p, d_out_p)).astype(mxu_dtype),
        b3=_pad_to(b3.reshape(1, -1), (1, d_out_p)).astype(jnp.float32),
    )


# ---------------------------------------------------------------------------
# Forward wrapper
# ---------------------------------------------------------------------------
def mlp_forward(x, params, *, tm_max=1024):
    """Fused 3-layer MLP forward. x: [B, D_in]; returns [B, D_out] (x.dtype)."""
    B, d_in = x.shape
    assert d_in == params["d_in"], "input feature size mismatch"
    d_out = params["d_out"]
    w1, b1, w2, b2, w3, b3 = (params[k] for k in
                              ("w1", "b1", "w2", "b2", "w3", "b3"))
    d_in_p, h1_p = w1.shape
    h2_p = w2.shape[1]
    d_out_p = w3.shape[1]

    mxu_bytes = jnp.dtype(w1.dtype).itemsize
    x_bytes = jnp.dtype(x.dtype).itemsize
    f32 = 4

    # ---- VMEM budget & batch-tile selection --------------------------------
    vmem_cap = _vmem_capacity_bytes()
    resident = ((d_in_p * h1_p + h1_p * h2_p + h2_p * d_out_p) * mxu_bytes
                + (h1_p + h2_p + d_out_p) * f32)          # single-buffered
    # TODO(synk): if `resident` alone exceeds ~70% of VMEM (large hidden dims),
    # tile H1/H2/D_out over extra grid axes or stream weights from HBM with
    # pltpu.emit_pipeline instead of keeping them resident.

    # VMEM that grows per batch row: double-buffered x/out tiles, f32 h1/h2
    # intermediates and mxu-dtype casted copies of x/h1/h2.
    row_bytes = (2 * (d_in_p + d_out_p) * x_bytes
                 + (h1_p + h2_p) * f32
                 + (d_in_p + h1_p + h2_p) * mxu_bytes)
    tile_budget = int(0.70 * vmem_cap) - resident
    rows_fit = max(tile_budget, 8 * row_bytes) // row_bytes
    tm_cap = max(8, min(tm_max, _round_down(int(rows_fit), 8)))

    b_sub = _round_up(B, 8)
    n_tiles = _cdiv(b_sub, tm_cap)
    if b_sub >= 16:
        n_tiles = max(n_tiles, 2)        # give both v7x TensorCores work
    tm = _round_up(_cdiv(b_sub, n_tiles), 8)   # minimize batch padding
    n_tiles = _cdiv(b_sub, tm)
    b_pad = tm * n_tiles

    x_p = _pad_to(x, (b_pad, d_in_p))

    needed = (resident
              + 2 * tm * (d_in_p + d_out_p) * x_bytes
              + tm * ((h1_p + h2_p) * f32
                      + (d_in_p + h1_p + h2_p) * mxu_bytes))
    vmem_limit = int(min(max(needed * 1.3, 4 * 1024 * 1024), 0.90 * vmem_cap))

    flops = 2 * b_pad * (d_in_p * h1_p + h1_p * h2_p + h2_p * d_out_p)
    bytes_accessed = int(x_p.size * x_bytes
                         + (w1.size + w2.size + w3.size) * mxu_bytes
                         + (b1.size + b2.size + b3.size) * f32
                         + b_pad * d_out_p * x_bytes)

    def call(resident_single_buffered):
        def rspec(a):
            idx = lambda i: (0, 0)       # block index never changes
            if resident_single_buffered:
                return pl.BlockSpec(a.shape, idx,
                                    pipeline_mode=pl.Buffered(1))
            return pl.BlockSpec(a.shape, idx)

        # x / out stay default double-buffered (sweep pl.Buffered(3) on v7x
        # for long, mem-bound grids if DMA latency shows up exposed).
        return pl.pallas_call(
            mlp_kernel,
            out_shape=jax.ShapeDtypeStruct((b_pad, d_out_p), x.dtype),
            grid_spec=pltpu.PrefetchScalarGridSpec(
                num_scalar_prefetch=0,
                grid=(n_tiles,),
                in_specs=[
                    pl.BlockSpec((tm, d_in_p), lambda i: (i, 0)),   # x tiled
                    rspec(w1), rspec(b1),
                    rspec(w2), rspec(b2),
                    rspec(w3), rspec(b3),
                ],
                out_specs=pl.BlockSpec((tm, d_out_p), lambda i: (i, 0)),
            ),
            compiler_params=pltpu.CompilerParams(
                dimension_semantics=("parallel",),
                vmem_limit_bytes=vmem_limit,
            ),
            cost_estimate=pl.CostEstimate(
                flops=flops, transcendentals=0,
                bytes_accessed=bytes_accessed),
        )(x_p, w1, b1, w2, b2, w3, b3)

    try:
        out_p = call(True)
    except Exception:
        # Fallback for jax versions without single-buffer pipeline_mode.
        out_p = call(False)

    # slice away batch padding and zero-padded output lanes
    return out_p[:B, :d_out]


# ---------------------------------------------------------------------------
# Parameter init (uniform like torch.nn.Linear default) and reference
# ---------------------------------------------------------------------------
def init_params(key, input_size, hidden_size, output_size, dtype=jnp.float32):
    dims = [input_size, hidden_size[0], hidden_size[1], output_size]
    params = []
    for i in range(3):
        fan_in, fan_out = dims[i], dims[i + 1]
        key, kw, kb = jax.random.split(key, 3)
        bound = 1.0 / float(fan_in) ** 0.5
        # Stored as [in, out] (transposed relative to torch's [out, in]).
        w = jax.random.uniform(kw, (fan_in, fan_out), dtype, -bound, bound)
        b = jax.random.uniform(kb, (1, fan_out), dtype, -bound, bound)
        params += [w, b]
    return params


def mlp_reference(x, w1, b1, w2, b2, w3, b3):
    h1 = jnp.maximum(x @ w1 + b1, 0.0)
    h2 = jnp.maximum(h1 @ w2 + b2, 0.0)
    return h2 @ w3 + b3


# ---------------------------------------------------------------------------
# Demo / correctness check
# ---------------------------------------------------------------------------
if __name__ == "__main__":
    batch = 8
    input_size = 16
    hidden_size = (32, 32)
    output_size = 4

    key = jax.random.PRNGKey(0)
    key, kx = jax.random.split(key)
    x = jax.random.normal(kx, (batch, input_size), jnp.float32)

    w1, b1, w2, b2, w3, b3 = init_params(key, input_size, hidden_size,
                                         output_size)
    ref = mlp_reference(x, w1, b1, w2, b2, w3, b3)

    # Default bf16-weight MXU path (f32 accumulate / f32 epilogue).
    params_bf16 = prepare_params(w1, b1, w2, b2, w3, b3,
                                 mxu_dtype=jnp.bfloat16)
    out_bf16 = jax.block_until_ready(mlp_forward(x, params_bf16))
    assert out_bf16.shape == (batch, output_size)
    # bf16 errors compound across the three matmuls -> relaxed tolerance.
    assert jnp.allclose(out_bf16, ref, atol=5e-2, rtol=5e-2)

    # f32 MXU path — tight tolerance.
    params_f32 = prepare_params(w1, b1, w2, b2, w3, b3, mxu_dtype=jnp.float32)
    out_f32 = jax.block_until_ready(mlp_forward(x, params_f32))
    assert jnp.allclose(out_f32, ref, atol=1e-5, rtol=1e-5)

    # Multi-tile batch (exercises >=2 grid steps + padding-minimizing tm).
    key, kx2 = jax.random.split(key)
    x2 = jax.random.normal(kx2, (40, input_size), jnp.float32)
    ref2 = mlp_reference(x2, w1, b1, w2, b2, w3, b3)
    out2 = jax.block_until_ready(mlp_forward(x2, params_bf16))
    assert out2.shape == (40, output_size)
    assert jnp.allclose(out2, ref2, atol=5e-2, rtol=5e-2)

    print("KERNEL_OK")
</pallas_src>

<mosaic_0001>
module attributes {stable_mosaic.version = 11 : i64} {
  func.func @mlp_kernel(%arg0: i32, %arg1: memref<8x128xf32, #tpu.memory_space<vmem>>, %arg2: memref<128x128xbf16, #tpu.memory_space<vmem>>, %arg3: memref<1x128xf32, #tpu.memory_space<vmem>>, %arg4: memref<128x128xbf16, #tpu.memory_space<vmem>>, %arg5: memref<1x128xf32, #tpu.memory_space<vmem>>, %arg6: memref<128x128xbf16, #tpu.memory_space<vmem>>, %arg7: memref<1x128xf32, #tpu.memory_space<vmem>>, %arg8: memref<8x128xf32, #tpu.memory_space<vmem>>) attributes {dimension_semantics = [#tpu.dimension_semantics<parallel>], iteration_bounds = array<i64: 1>, scalar_prefetch = 0 : i64, scratch_operands = 0 : i64, tpu.core_type = #tpu.core_type<tc>, window_params = [{transform_indices = @transform_0, window_bounds = array<i64: 8, 128>}, {pipeline_mode = #tpu.pipeline_mode<synchronous>, transform_indices = @transform_1, window_bounds = array<i64: 128, 128>}, {pipeline_mode = #tpu.pipeline_mode<synchronous>, transform_indices = @transform_2, window_bounds = array<i64: 1, 128>}, {pipeline_mode = #tpu.pipeline_mode<synchronous>, transform_indices = @transform_3, window_bounds = array<i64: 128, 128>}, {pipeline_mode = #tpu.pipeline_mode<synchronous>, transform_indices = @transform_4, window_bounds = array<i64: 1, 128>}, {pipeline_mode = #tpu.pipeline_mode<synchronous>, transform_indices = @transform_5, window_bounds = array<i64: 128, 128>}, {pipeline_mode = #tpu.pipeline_mode<synchronous>, transform_indices = @transform_6, window_bounds = array<i64: 1, 128>}, {transform_indices = @transform_7, window_bounds = array<i64: 8, 128>}]} {
    %c0 = arith.constant 0 : index
    %c0_0 = arith.constant 0 : index
    %0 = vector.load %arg1[%c0, %c0_0] : memref<8x128xf32, #tpu.memory_space<vmem>>, vector<8x128xf32>
    %1 = arith.truncf %0 : vector<8x128xf32> to vector<8x128xbf16>
    %c0_1 = arith.constant 0 : index
    %c0_2 = arith.constant 0 : index
    %2 = vector.load %arg2[%c0_1, %c0_2] : memref<128x128xbf16, #tpu.memory_space<vmem>>, vector<128x128xbf16>
    %cst = arith.constant dense<0.000000e+00> : vector<8x128xf32>
    %3 = tpu.matmul %1, %2, %cst {dimension_numbers = #tpu.dot_dimension_numbers<[1], [0], [0], [1], [0, 0, 1, 1], [], []>} : vector<8x128xbf16>, vector<128x128xbf16>, vector<8x128xf32> -> vector<8x128xf32>
    %c0_3 = arith.constant 0 : index
    %c0_4 = arith.constant 0 : index
    %4 = vector.load %arg3[%c0_3, %c0_4] : memref<1x128xf32, #tpu.memory_space<vmem>>, vector<1x128xf32>
    %5 = vector.broadcast %4 : vector<1x128xf32> to vector<8x128xf32>
    %6 = arith.addf %3, %5 : vector<8x128xf32>
    %cst_5 = arith.constant 0.000000e+00 : f32
    %7 = vector.broadcast %cst_5 : f32 to vector<8x128xf32>
    %8 = arith.maximumf %6, %7 : vector<8x128xf32>
    %9 = arith.truncf %8 : vector<8x128xf32> to vector<8x128xbf16>
    %c0_6 = arith.constant 0 : index
    %c0_7 = arith.constant 0 : index
    %10 = vector.load %arg4[%c0_6, %c0_7] : memref<128x128xbf16, #tpu.memory_space<vmem>>, vector<128x128xbf16>
    %cst_8 = arith.constant dense<0.000000e+00> : vector<8x128xf32>
    %11 = tpu.matmul %9, %10, %cst_8 {dimension_numbers = #tpu.dot_dimension_numbers<[1], [0], [0], [1], [0, 0, 1, 1], [], []>} : vector<8x128xbf16>, vector<128x128xbf16>, vector<8x128xf32> -> vector<8x128xf32>
    %c0_9 = arith.constant 0 : index
    %c0_10 = arith.constant 0 : index
    %12 = vector.load %arg5[%c0_9, %c0_10] : memref<1x128xf32, #tpu.memory_space<vmem>>, vector<1x128xf32>
    %13 = vector.broadcast %12 : vector<1x128xf32> to vector<8x128xf32>
    %14 = arith.addf %11, %13 : vector<8x128xf32>
    %cst_11 = arith.constant 0.000000e+00 : f32
    %15 = vector.broadcast %cst_11 : f32 to vector<8x128xf32>
    %16 = arith.maximumf %14, %15 : vector<8x128xf32>
    %17 = arith.truncf %16 : vector<8x128xf32> to vector<8x128xbf16>
    %c0_12 = arith.constant 0 : index
    %c0_13 = arith.constant 0 : index
    %18 = vector.load %arg6[%c0_12, %c0_13] : memref<128x128xbf16, #tpu.memory_space<vmem>>, vector<128x128xbf16>
    %cst_14 = arith.constant dense<0.000000e+00> : vector<8x128xf32>
    %19 = tpu.matmul %17, %18, %cst_14 {dimension_numbers = #tpu.dot_dimension_numbers<[1], [0], [0], [1], [0, 0, 1, 1], [], []>} : vector<8x128xbf16>, vector<128x128xbf16>, vector<8x128xf32> -> vector<8x128xf32>
    %c0_15 = arith.constant 0 : index
    %c0_16 = arith.constant 0 : index
    %20 = vector.load %arg7[%c0_15, %c0_16] : memref<1x128xf32, #tpu.memory_space<vmem>>, vector<1x128xf32>
    %21 = vector.broadcast %20 : vector<1x128xf32> to vector<8x128xf32>
    %22 = arith.addf %19, %21 : vector<8x128xf32>
    %c0_17 = arith.constant 0 : index
    %c0_18 = arith.constant 0 : index
    %23 = vector.load %arg8[%c0_17, %c0_18] : memref<8x128xf32, #tpu.memory_space<vmem>>, vector<8x128xf32>
    tpu.vector_store %arg8[%c0_17, %c0_18], %22 {strides = array<i32>} : memref<8x128xf32, #tpu.memory_space<vmem>>, vector<8x128xf32>,
    return
  }
  func.func @transform_0(%arg0: i32) -> (i32, i32) {
    %c0_i32 = arith.constant 0 : i32
    %c0_i32_0 = arith.constant 0 : i32
    return %arg0, %c0_i32 : i32, i32
  }
  func.func @transform_1(%arg0: i32) -> (i32, i32) {
    %c0_i32 = arith.constant 0 : i32
    %c0_i32_0 = arith.constant 0 : i32
    %c0_i32_1 = arith.constant 0 : i32
    return %c0_i32, %c0_i32_0 : i32, i32
  }
  func.func @transform_2(%arg0: i32) -> (i32, i32) {
    %c0_i32 = arith.constant 0 : i32
    %c0_i32_0 = arith.constant 0 : i32
    %c0_i32_1 = arith.constant 0 : i32
    return %c0_i32, %c0_i32_0 : i32, i32
  }
  func.func @transform_3(%arg0: i32) -> (i32, i32) {
    %c0_i32 = arith.constant 0 : i32
    %c0_i32_0 = arith.constant 0 : i32
    %c0_i32_1 = arith.constant 0 : i32
    return %c0_i32, %c0_i32_0 : i32, i32
  }
  func.func @transform_4(%arg0: i32) -> (i32, i32) {
    %c0_i32 = arith.constant 0 : i32
    %c0_i32_0 = arith.constant 0 : i32
    %c0_i32_1 = arith.constant 0 : i32
    return %c0_i32, %c0_i32_0 : i32, i32
  }
  func.func @transform_5(%arg0: i32) -> (i32, i32) {
    %c0_i32 = arith.constant 0 : i32
    %c0_i32_0 = arith.constant 0 : i32
    %c0_i32_1 = arith.constant 0 : i32
    return %c0_i32, %c0_i32_0 : i32, i32
  }
  func.func @transform_6(%arg0: i32) -> (i32, i32) {
    %c0_i32 = arith.constant 0 : i32
    %c0_i32_0 = arith.constant 0 : i32
    %c0_i32_1 = arith.constant 0 : i32
    return %c0_i32, %c0_i32_0 : i32, i32
  }
  func.func @transform_7(%arg0: i32) -> (i32, i32) {
    %c0_i32 = arith.constant 0 : i32
    %c0_i32_0 = arith.constant 0 : i32
    return %arg0, %c0_i32 : i32, i32
  }
}

module attributes {stable_mosaic.version = 11 : i64} {
  func.func @mlp_kernel(%arg0: i32, %arg1: memref<8x128xf32, #tpu.memory_space<vmem>>, %arg2: memref<128x128xbf16, #tpu.memory_space<vmem>>, %arg3: memref<1x128xf32, #tpu.memory_space<vmem>>, %arg4: memref<128x128xbf16, #tpu.memory_space<vmem>>, %arg5: memref<1x128xf32, #tpu.memory_space<vmem>>, %arg6: memref<128x128xbf16, #tpu.memory_space<vmem>>, %arg7: memref<1x128xf32, #tpu.memory_space<vmem>>, %arg8: memref<8x128xf32, #tpu.memory_space<vmem>>) attributes {dimension_semantics = [#tpu.dimension_semantics<parallel>], iteration_bounds = array<i64: 1>, scalar_prefetch = 0 : i64, scratch_operands = 0 : i64, tpu.core_type = #tpu.core_type<tc>, window_params = [{transform_indices = @transform_0, window_bounds = array<i64: 8, 128>}, {pipeline_mode = #tpu.pipeline_mode<synchronous>, transform_indices = @transform_1, window_bounds = array<i64: 128, 128>}, {pipeline_mode = #tpu.pipeline_mode<synchronous>, transform_indices = @transform_2, window_bounds = array<i64: 1, 128>}, {pipeline_mode = #tpu.pipeline_mode<synchronous>, transform_indices = @transform_3, window_bounds = array<i64: 128, 128>}, {pipeline_mode = #tpu.pipeline_mode<synchronous>, transform_indices = @transform_4, window_bounds = array<i64: 1, 128>}, {pipeline_mode = #tpu.pipeline_mode<synchronous>, transform_indices = @transform_5, window_bounds = array<i64: 128, 128>}, {pipeline_mode = #tpu.pipeline_mode<synchronous>, transform_indices = @transform_6, window_bounds = array<i64: 1, 128>}, {transform_indices = @transform_7, window_bounds = array<i64: 8, 128>}]} {
    %c0 = arith.constant 0 : index
    %c0_0 = arith.constant 0 : index
    %0 = vector.load %arg1[%c0, %c0_0] : memref<8x128xf32, #tpu.memory_space<vmem>>, vector<8x128xf32>
    %1 = arith.truncf %0 : vector<8x128xf32> to vector<8x128xbf16>
    %c0_1 = arith.constant 0 : index
    %c0_2 = arith.constant 0 : index
    %2 = vector.load %arg2[%c0_1, %c0_2] : memref<128x128xbf16, #tpu.memory_space<vmem>>, vector<128x128xbf16>
    %cst = arith.constant dense<0.000000e+00> : vector<8x128xf32>
    %3 = tpu.matmul %1, %2, %cst {dimension_numbers = #tpu.dot_dimension_numbers<[1], [0], [0], [1], [0, 0, 1, 1], [], []>} : vector<8x128xbf16>, vector<128x128xbf16>, vector<8x128xf32> -> vector<8x128xf32>
    %c0_3 = arith.constant 0 : index
    %c0_4 = arith.constant 0 : index
    %4 = vector.load %arg3[%c0_3, %c0_4] : memref<1x128xf32, #tpu.memory_space<vmem>>, vector<1x128xf32>
    %5 = vector.broadcast %4 : vector<1x128xf32> to vector<8x128xf32>
    %6 = arith.addf %3, %5 : vector<8x128xf32>
    %cst_5 = arith.constant 0.000000e+00 : f32
    %7 = vector.broadcast %cst_5 : f32 to vector<8x128xf32>
    %8 = arith.maximumf %6, %7 : vector<8x128xf32>
    %9 = arith.truncf %8 : vector<8x128xf32> to vector<8x128xbf16>
    %c0_6 = arith.constant 0 : index
    %c0_7 = arith.constant 0 : index
    %10 = vector.load %arg4[%c0_6, %c0_7] : memref<128x128xbf16, #tpu.memory_space<vmem>>, vector<128x128xbf16>
    %cst_8 = arith.constant dense<0.000000e+00> : vector<8x128xf32>
    %11 = tpu.matmul %9, %10, %cst_8 {dimension_numbers = #tpu.dot_dimension_numbers<[1], [0], [0], [1], [0, 0, 1, 1], [], []>} : vector<8x128xbf16>, vector<128x128xbf16>, vector<8x128xf32> -> vector<8x128xf32>
    %c0_9 = arith.constant 0 : index
    %c0_10 = arith.constant 0 : index
    %12 = vector.load %arg5[%c0_9, %c0_10] : memref<1x128xf32, #tpu.memory_space<vmem>>, vector<1x128xf32>
    %13 = vector.broadcast %12 : vector<1x128xf32> to vector<8x128xf32>
    %14 = arith.addf %11, %13 : vector<8x128xf32>
    %cst_11 = arith.constant 0.000000e+00 : f32
    %15 = vector.broadcast %cst_11 : f32 to vector<8x128xf32>
    %16 = arith.maximumf %14, %15 : vector<8x128xf32>
    %17 = arith.truncf %16 : vector<8x128xf32> to vector<8x128xbf16>
    %c0_12 = arith.constant 0 : index
    %c0_13 = arith.constant 0 : index
    %18 = vector.load %arg6[%c0_12, %c0_13] : memref<128x128xbf16, #tpu.memory_space<vmem>>, vector<128x128xbf16>
    %cst_14 = arith.constant dense<0.000000e+00> : vector<8x128xf32>
    %19 = tpu.matmul %17, %18, %cst_14 {dimension_numbers = #tpu.dot_dimension_numbers<[1], [0], [0], [1], [0, 0, 1, 1], [], []>} : vector<8x128xbf16>, vector<128x128xbf16>, vector<8x128xf32> -> vector<8x128xf32>
    %c0_15 = arith.constant 0 : index
    %c0_16 = arith.constant 0 : index
    %20 = vector.load %arg7[%c0_15, %c0_16] : memref<1x128xf32, #tpu.memory_space<vmem>>, vector<1x128xf32>
    %21 = vector.broadcast %20 : vector<1x128xf32> to vector<8x128xf32>
    %22 = arith.addf %19, %21 : vector<8x128xf32>
    %c0_17 = arith.constant 0 : index
    %c0_18 = arith.constant 0 : index
    %23 = vector.load %arg8[%c0_17, %c0_18] : memref<8x128xf32, #tpu.memory_space<vmem>>, vector<8x128xf32>
    tpu.vector_store %arg8[%c0_17, %c0_18], %22 {strides = array<i32>} : memref<8x128xf32, #tpu.memory_space<vmem>>, vector<8x128xf32>,
    return
  }
  func.func @transform_0(%arg0: i32) -> (i32, i32) {
    %c0_i32 = arith.constant 0 : i32
    %c0_i32_0 = arith.constant 0 : i32
    return %arg0, %c0_i32 : i32, i32
  }
  func.func @transform_1(%arg0: i32) -> (i32, i32) {
    %c0_i32 = arith.constant 0 : i32
    %c0_i32_0 = arith.constant 0 : i32
    %c0_i32_1 = arith.constant 0 : i32
    return %c0_i32, %c0_i32_0 : i32, i32
  }
  func.func @transform_2(%arg0: i32) -> (i32, i32) {
    %c0_i32 = arith.constant 0 : i32
    %c0_i32_0 = arith.constant 0 : i32
    %c0_i32_1 = arith.constant 0 : i32
    return %c0_i32, %c0_i32_0 : i32, i32
  }
  func.func @transform_3(%arg0: i32) -> (i32, i32) {
    %c0_i32 = arith.constant 0 : i32
    %c0_i32_0 = arith.constant 0 : i32
    %c0_i32_1 = arith.constant 0 : i32
    return %c0_i32, %c0_i32_0 : i32, i32
  }
  func.func @transform_4(%arg0: i32) -> (i32, i32) {
    %c0_i32 = arith.constant 0 : i32
    %c0_i32_0 = arith.constant 0 : i32
    %c0_i32_1 = arith.constant 0 : i32
    return %c0_i32, %c0_i32_0 : i32, i32
  }
  func.func @transform_5(%arg0: i32) -> (i32, i32) {
    %c0_i32 = arith.constant 0 : i32
    %c0_i32_0 = arith.constant 0 : i32
    %c0_i32_1 = arith.constant 0 : i32
    return %c0_i32, %c0_i32_0 : i32, i32
  }
  func.func @transform_6(%arg0: i32) -> (i32, i32) {
    %c0_i32 = arith.constant 0 : i32
    %c0_i32_0 = arith.constant 0 : i32
    %c0_i32_1 = arith.constant 0 : i32
    return %c0_i32, %c0_i32_0 : i32, i32
  }
  func.func @transform_7(%arg0: i32) -> (i32, i32) {
    %c0_i32 = arith.constant 0 : i32
    %c0_i32_0 = arith.constant 0 : i32
    return %arg0, %c0_i32 : i32, i32
  }
}

</mosaic_0001>

<bundles_post_ra>
// kernel: tpu_custom_call.1
= control target key start
LH: loop header
LB: loop body
LE: loop exit
PB: predicated region body
PF: predicated region fallthrough
CT: control target
= control target key end

     0   :  { %12 = vsyncpa [#allocation3], 0  ;;  %s686_s0 = inlined_call_operand.hbm [shape: f32[8,128], index: 0, kind: input, shape index: {}]   ;;  %s687_s1 = inlined_call_operand.hbm [shape: bf16[128,128], index: 1, kind: input, shape index: {}]   ;;  %s688_s2 = inlined_call_operand.vmem [shape: f32[1,128], index: 2, kind: input, shape index: {}]   ;;  %s689_s3 = inlined_call_operand.hbm [shape: bf16[128,128], index: 3, kind: input, shape index: {}]   ;;  %s690_s4 = inlined_call_operand.vmem [shape: f32[1,128], index: 4, kind: input, shape index: {}]   ;;  %s691_s5 = inlined_call_operand.hbm [shape: bf16[128,128], index: 5, kind: input, shape index: {}]   ;;  %s692_s6 = inlined_call_operand.vmem [shape: f32[1,128], index: 6, kind: input, shape index: {}]   ;;  %s693_s7 = inlined_call_operand.hbm [shape: f32[8,128], index: 7, kind: output, shape index: {}]  }
   0x1   :  { %13 = vsyncpa [#allocation6], 0 }
   0x2   :  { %14 = vsyncpa [#allocation9], 0  ;;  %s31_s26 = sshll.u32 %s687_s1, 4  ;;  %s32_s26 = int_to_ptr.hbm [resolvable:$true] %s31_s26 }
   0x3   :  { %15 = vsyncpa [#allocation4], 0  ;;  %s615_s27 = smov [#allocation5]   ;;  %s21_s8 = sshll.u32 %s686_s0, 4  ;;  %s22_s8 = int_to_ptr.hbm [resolvable:$true] %s21_s8 }
   0x4   :  { %s33_s28 = sshll.u32 %s615_s27, 4  ;;  %s616_s9 = smov 64   ;;  %s34_s28 = int_to_ptr.vmem [resolvable:$true] %s33_s28 }
   0x5   :  { %s617_s10 = smov 4   ;;  %s618_s11 = smov [#allocation2]  }
   0x6   :  { %39 = dma.hbm_to_vmem [thread:$0]  %s32_s26, 1024, %s34_s28, [#allocation6], %s616_s9, %s616_s9, %s617_s10  }
   0x7   :  { %s23_s12 = sshll.u32 %s618_s11, 4  ;;  %s46_s15 = sshll.u32 %s689_s3, 4  ;;  %s24_s12 = int_to_ptr.vmem [resolvable:$true] %s23_s12  ;;  %s47_s15 = int_to_ptr.hbm [resolvable:$true] %s46_s15 }
   0x8   :  { %26 = dma.hbm_to_vmem [thread:$0]  %s22_s8, 128, %s24_s12, [#allocation3]  }
   0x9   :  { %s61_s17 = sshll.u32 %s691_s5, 4  ;;  %s619_s18 = smov [#allocation7]   ;;  %s62_s17 = int_to_ptr.hbm [resolvable:$true] %s61_s17 }
   0xa   :  { %s48_s19 = sshll.u32 %s619_s18, 4  ;;  %s620_s0 = smov [#allocation8]   ;;  %s49_s19 = int_to_ptr.vmem [resolvable:$true] %s48_s19 }
   0xb   :  { %54 = dma.hbm_to_vmem [thread:$0]  %s47_s15, 1024, %s49_s19, [#allocation6], %s616_s9, %s616_s9, %s617_s10  }
   0xc   :  { %s63_s20 = sshll.u32 %s620_s0, 4  ;;  %s64_s20 = int_to_ptr.vmem [resolvable:$true] %s63_s20 }
   0xd   :  { %69 = dma.hbm_to_vmem [thread:$0]  %s62_s17, 1024, %s64_s20, [#allocation9], %s616_s9, %s616_s9, %s617_s10  }
   0xe   :  { %607 = dma.done.wait [#allocation3], 128  }
   0xf   :  { %608 = vsyncadd [#allocation3], 4294967168 }
  0x10   :  { %609 = dma.done.wait [#allocation6], 2048  }
  0x11   :  { %610 = vsyncadd [#allocation6], 4294965248 }
  0x12   :  { %611 = dma.done.wait [#allocation9], 1024  }
  0x13   :  { %612 = vsyncadd [#allocation9], 4294966272  ;;  %v460_v0 = vld [vmem:[#allocation5 + $0x38] sm:$0xff]  ;;  %v459_v1 = vld [vmem:[#allocation5 + $0x30] sm:$0xff]  ;;  %s621_s24 = smov [#allocation10]   ;;  %s345_s28 = sshll.u32 %s693_s7, 4  ;;  %s346_s28 = int_to_ptr.hbm [resolvable:$true] %s345_s28 }
  0x14   :  { %158 = vmatpush.bf16.msra.mxu0 %v460_v0  ;;  %v468_v2 = vld [vmem:[#allocation7 + $0x38] sm:$0xff]  ;;  %v467_v3 = vld [vmem:[#allocation7 + $0x30] sm:$0xff]  ;;  %v458_v4 = vld [vmem:[#allocation5 + $0x28] sm:$0xff]  ;;  %s343_s25 = sshll.u32 %s621_s24, 4  ;;  %s344_s25 = int_to_ptr.vmem [resolvable:$true] %s343_s25 }
  0x15   :  { %241 = vmatpush.bf16.msra.mxu1 %v468_v2  ;;  %v466_v5 = vld [vmem:[#allocation7 + $0x28] sm:$0xff]  ;;  %v457_v6 = vld [vmem:[#allocation5 + $0x20] sm:$0xff]  ;;  %v456_v8 = vld [vmem:[#allocation5 + $0x18] sm:$0xff] }
  0x16   :  { %v465_v7 = vld [vmem:[#allocation7 + $0x20] sm:$0xff]  ;;  %v464_v9 = vld [vmem:[#allocation7 + $0x18] sm:$0xff]  ;;  %v455_v10 = vld [vmem:[#allocation5 + $0x10] sm:$0xff] }
  0x17   :  { %v463_v11 = vld [vmem:[#allocation7 + $0x10] sm:$0xff]  ;;  %v454_v12 = vld [vmem:[#allocation5 + $0x8] sm:$0xff]  ;;  %v453_v13 = vld [vmem:[#allocation5] sm:$0xff] }
  0x18   :  { %159 = vmatpush.bf16.msra.mxu0 %v459_v1  ;;  %v88_v14 = vld [vmem:[#allocation2] sm:$0xff]  ;;  %v462_v16 = vld [vmem:[#allocation7 + $0x8] sm:$0xff]  ;;  %v461_v17 = vld [vmem:[#allocation7] sm:$0xff] }
  0x19   :  { %242 = vmatpush.bf16.msra.mxu1 %v467_v3  ;;  %v89_v15 = vpack.c.bf16 %v88_v14, %v88_v14  ;;  %v476_v18 = vld [vmem:[#allocation8 + $0x38] sm:$0xff]  ;;  %v475_v19 = vld [vmem:[#allocation8 + $0x30] sm:$0xff]  ;;  %v474_v20 = vld [vmem:[#allocation8 + $0x28] sm:$0xff] }
  0x1a   :  { %324 = vmatpush.bf16.msra.mxu2 %v476_v18  ;;  %v473_v21 = vld [vmem:[#allocation8 + $0x20] sm:$0xff]  ;;  %v472_v22 = vld [vmem:[#allocation8 + $0x18] sm:$0xff]  ;;  %v471_v23 = vld [vmem:[#allocation8 + $0x10] sm:$0xff] }
  0x1b   :  { %v484_v24 = vld [vmem:[%s688_s2] ss:$0 sm:$0xff]  ;;  %v470_v30 = vld [vmem:[#allocation8 + $0x8] sm:$0xff]  ;;  %v469_v31 = vld [vmem:[#allocation8] sm:$0xff] }
  0x1c   :  { %160 = vmatpush.bf16.msra.mxu0 %v458_v4  ;;  %v485_v32 = vld [vmem:[%s690_s4] ss:$0 sm:$0xff] }
  0x1d   :  { %243 = vmatpush.bf16.msra.mxu1 %v466_v5  ;;  %v486_v38 = vld [vmem:[%s692_s6] ss:$0 sm:$0xff] }
  0x1e   :  { %325 = vmatpush.bf16.msra.mxu2 %v475_v19 }
  0x20   :  { %161 = vmatpush.bf16.msra.mxu0 %v457_v6 }
  0x21   :  { %244 = vmatpush.bf16.msra.mxu1 %v465_v7 }
  0x22   :  { %326 = vmatpush.bf16.msra.mxu2 %v474_v20 }
  0x24   :  { %162 = vmatpush.bf16.msra.mxu0 %v456_v8 }
  0x25   :  { %245 = vmatpush.bf16.msra.mxu1 %v464_v9 }
  0x26   :  { %327 = vmatpush.bf16.msra.mxu2 %v473_v21 }
  0x28   :  { %163 = vmatpush.bf16.msra.mxu0 %v455_v10 }
  0x29   :  { %246 = vmatpush.bf16.msra.mxu1 %v463_v11 }
  0x2a   :  { %328 = vmatpush.bf16.msra.mxu2 %v472_v22 }
  0x2c   :  { %164 = vmatpush.bf16.msra.mxu0 %v454_v12 }
  0x2d   :  { %247 = vmatpush.bf16.msra.mxu1 %v462_v16 }
  0x2e   :  { %329 = vmatpush.bf16.msra.mxu2 %v471_v23 }
  0x30   :  { %165 = vmatpush.bf16.msra.mxu0 %v453_v13 }
  0x31   :  { %248 = vmatpush.bf16.msra.mxu1 %v461_v17 }
  0x32   :  { %330 = vmatpush.bf16.msra.mxu2 %v470_v30 }
  0x33   :  { %166 = vmatmul.bf16.vlgmr.msra.gmra.mxu0 %v89_v15 }
  0x36   :  { %331 = vmatpush.bf16.msra.mxu2 %v469_v31 }
  0xb0   :  { %v167_v25 = vpop.f32.mrf.mxu0 }
  0xb1   :  { %v168_v26 = vadd.f32 %v484_v24, %v167_v25 }
  0xb3   :  { %v171_v27 = vmax.f32 %v168_v26, 0.0 }
  0xb5   :  { %v172_v28 = vpack.c.bf16 %v171_v27, %v171_v27 }
  0xb7   :  { %249 = vmatmul.bf16.vlgmr.msra.gmra.mxu1 %v172_v28 }
  0xb8   :  { %v169_v29 = vpop.f32.mrf.mxu0 }
 0x134   :  { %v250_v33 = vpop.f32.mrf.mxu1 }
 0x135   :  { %v251_v34 = vadd.f32 %v485_v32, %v250_v33 }
 0x137   :  { %v254_v35 = vmax.f32 %v251_v34, 0.0 }
 0x139   :  { %v255_v36 = vpack.c.bf16 %v254_v35, %v254_v35 }
 0x13b   :  { %332 = vmatmul.bf16.vlgmr.msra.gmra.mxu2 %v255_v36 }
 0x13c   :  { %v252_v37 = vpop.f32.mrf.mxu1 }
 0x1be   :  { %v333_v39 = vpop.f32.mrf.mxu2 }
 0x1bf   :  { %v334_v40 = vadd.f32 %v486_v38, %v333_v39 }
 0x1c1   :  { %337 = vst [vmem:[#allocation10] sm:$0xff] %v334_v40 }
 0x1c2   :  { %348 = dma.vmem_to_hbm [thread:$0]  %s344_s25, 128, %s346_s28, [#allocation4]  }
 0x1c6   :  { %v335_v41 = vpop.f32.mrf.mxu2 }
 0x1c7   :  { %613 = dma.done.wait [#allocation4], 128  }
 0x1c8   :  { %614 = vsyncadd [#allocation4], 4294967168 }
 0x1c9   :  { %353 = vsyncpa [#allocation3], 1 }
 0x1ca   :  { %354 = vsyncpa [#allocation6], 1 }
 0x1cb   :  { %355 = vsyncpa [#allocation9], 1 }
 0x1cc   :  { %356 = vsyncpa [#allocation4], 1 }

// kernel: tpu_custom_call.1
= control target key start
LH: loop header
LB: loop body
LE: loop exit
PB: predicated region body
PF: predicated region fallthrough
CT: control target
= control target key end

     0   :  { %12 = vsyncpa [#allocation3], 0  ;;  %s686_s0 = inlined_call_operand.hbm [shape: f32[8,128], index: 0, kind: input, shape index: {}]   ;;  %s687_s1 = inlined_call_operand.hbm [shape: bf16[128,128], index: 1, kind: input, shape index: {}]   ;;  %s688_s2 = inlined_call_operand.vmem [shape: f32[1,128], index: 2, kind: input, shape index: {}]   ;;  %s689_s3 = inlined_call_operand.hbm [shape: bf16[128,128], index: 3, kind: input, shape index: {}]   ;;  %s690_s4 = inlined_call_operand.vmem [shape: f32[1,128], index: 4, kind: input, shape index: {}]   ;;  %s691_s5 = inlined_call_operand.hbm [shape: bf16[128,128], index: 5, kind: input, shape index: {}]   ;;  %s692_s6 = inlined_call_operand.vmem [shape: f32[1,128], index: 6, kind: input, shape index: {}]   ;;  %s693_s7 = inlined_call_operand.hbm [shape: f32[8,128], index: 7, kind: output, shape index: {}]  }
   0x1   :  { %13 = vsyncpa [#allocation6], 0 }
   0x2   :  { %14 = vsyncpa [#allocation9], 0  ;;  %s31_s26 = sshll.u32 %s687_s1, 4  ;;  %s32_s26 = int_to_ptr.hbm [resolvable:$true] %s31_s26 }
   0x3   :  { %15 = vsyncpa [#allocation4], 0  ;;  %s615_s27 = smov [#allocation5]   ;;  %s21_s8 = sshll.u32 %s686_s0, 4  ;;  %s22_s8 = int_to_ptr.hbm [resolvable:$true] %s21_s8 }
   0x4   :  { %s33_s28 = sshll.u32 %s615_s27, 4  ;;  %s616_s9 = smov 64   ;;  %s34_s28 = int_to_ptr.vmem [resolvable:$true] %s33_s28 }
   0x5   :  { %s617_s10 = smov 4   ;;  %s618_s11 = smov [#allocation2]  }
   0x6   :  { %39 = dma.hbm_to_vmem [thread:$0]  %s32_s26, 1024, %s34_s28, [#allocation6], %s616_s9, %s616_s9, %s617_s10  }
   0x7   :  { %s23_s12 = sshll.u32 %s618_s11, 4  ;;  %s46_s15 = sshll.u32 %s689_s3, 4  ;;  %s24_s12 = int_to_ptr.vmem [resolvable:$true] %s23_s12  ;;  %s47_s15 = int_to_ptr.hbm [resolvable:$true] %s46_s15 }
   0x8   :  { %26 = dma.hbm_to_vmem [thread:$0]  %s22_s8, 128, %s24_s12, [#allocation3]  }
   0x9   :  { %s61_s17 = sshll.u32 %s691_s5, 4  ;;  %s619_s18 = smov [#allocation7]   ;;  %s62_s17 = int_to_ptr.hbm [resolvable:$true] %s61_s17 }
   0xa   :  { %s48_s19 = sshll.u32 %s619_s18, 4  ;;  %s620_s0 = smov [#allocation8]   ;;  %s49_s19 = int_to_ptr.vmem [resolvable:$true] %s48_s19 }
   0xb   :  { %54 = dma.hbm_to_vmem [thread:$0]  %s47_s15, 1024, %s49_s19, [#allocation6], %s616_s9, %s616_s9, %s617_s10  }
   0xc   :  { %s63_s20 = sshll.u32 %s620_s0, 4  ;;  %s64_s20 = int_to_ptr.vmem [resolvable:$true] %s63_s20 }
   0xd   :  { %69 = dma.hbm_to_vmem [thread:$0]  %s62_s17, 1024, %s64_s20, [#allocation9], %s616_s9, %s616_s9, %s617_s10  }
   0xe   :  { %607 = dma.done.wait [#allocation3], 128  }
   0xf   :  { %608 = vsyncadd [#allocation3], 4294967168 }
  0x10   :  { %609 = dma.done.wait [#allocation6], 2048  }
  0x11   :  { %610 = vsyncadd [#allocation6], 4294965248 }
  0x12   :  { %611 = dma.done.wait [#allocation9], 1024  }
  0x13   :  { %612 = vsyncadd [#allocation9], 4294966272  ;;  %v460_v0 = vld [vmem:[#allocation5 + $0x38] sm:$0xff]  ;;  %v459_v1 = vld [vmem:[#allocation5 + $0x30] sm:$0xff]  ;;  %s621_s24 = smov [#allocation10]   ;;  %s345_s28 = sshll.u32 %s693_s7, 4  ;;  %s346_s28 = int_to_ptr.hbm [resolvable:$true] %s345_s28 }
  0x14   :  { %158 = vmatpush.bf16.msra.mxu0 %v460_v0  ;;  %v468_v2 = vld [vmem:[#allocation7 + $0x38] sm:$0xff]  ;;  %v467_v3 = vld [vmem:[#allocation7 + $0x30] sm:$0xff]  ;;  %v458_v4 = vld [vmem:[#allocation5 + $0x28] sm:$0xff]  ;;  %s343_s25 = sshll.u32 %s621_s24, 4  ;;  %s344_s25 = int_to_ptr.vmem [resolvable:$true] %s343_s25 }
  0x15   :  { %241 = vmatpush.bf16.msra.mxu1 %v468_v2  ;;  %v466_v5 = vld [vmem:[#allocation7 + $0x28] sm:$0xff]  ;;  %v457_v6 = vld [vmem:[#allocation5 + $0x20] sm:$0xff]  ;;  %v456_v8 = vld [vmem:[#allocation5 + $0x18] sm:$0xff] }
  0x16   :  { %v465_v7 = vld [vmem:[#allocation7 + $0x20] sm:$0xff]  ;;  %v464_v9 = vld [vmem:[#allocation7 + $0x18] sm:$0xff]  ;;  %v455_v10 = vld [vmem:[#allocation5 + $0x10] sm:$0xff] }
  0x17   :  { %v463_v11 = vld [vmem:[#allocation7 + $0x10] sm:$0xff]  ;;  %v454_v12 = vld [vmem:[#allocation5 + $0x8] sm:$0xff]  ;;  %v453_v13 = vld [vmem:[#allocation5] sm:$0xff] }
  0x18   :  { %159 = vmatpush.bf16.msra.mxu0 %v459_v1  ;;  %v88_v14 = vld [vmem:[#allocation2] sm:$0xff]  ;;  %v462_v16 = vld [vmem:[#allocation7 + $0x8] sm:$0xff]  ;;  %v461_v17 = vld [vmem:[#allocation7] sm:$0xff] }
  0x19   :  { %242 = vmatpush.bf16.msra.mxu1 %v467_v3  ;;  %v89_v15 = vpack.c.bf16 %v88_v14, %v88_v14  ;;  %v476_v18 = vld [vmem:[#allocation8 + $0x38] sm:$0xff]  ;;  %v475_v19 = vld [vmem:[#allocation8 + $0x30] sm:$0xff]  ;;  %v474_v20 = vld [vmem:[#allocation8 + $0x28] sm:$0xff] }
  0x1a   :  { %324 = vmatpush.bf16.msra.mxu2 %v476_v18  ;;  %v473_v21 = vld [vmem:[#allocation8 + $0x20] sm:$0xff]  ;;  %v472_v22 = vld [vmem:[#allocation8 + $0x18] sm:$0xff]  ;;  %v471_v23 = vld [vmem:[#allocation8 + $0x10] sm:$0xff] }
  0x1b   :  { %v484_v24 = vld [vmem:[%s688_s2] ss:$0 sm:$0xff]  ;;  %v470_v30 = vld [vmem:[#allocation8 + $0x8] sm:$0xff]  ;;  %v469_v31 = vld [vmem:[#allocation8] sm:$0xff] }
  0x1c   :  { %160 = vmatpush.bf16.msra.mxu0 %v458_v4  ;;  %v485_v32 = vld [vmem:[%s690_s4] ss:$0 sm:$0xff] }
  0x1d   :  { %243 = vmatpush.bf16.msra.mxu1 %v466_v5  ;;  %v486_v38 = vld [vmem:[%s692_s6] ss:$0 sm:$0xff] }
  0x1e   :  { %325 = vmatpush.bf16.msra.mxu2 %v475_v19 }
  0x20   :  { %161 = vmatpush.bf16.msra.mxu0 %v457_v6 }
  0x21   :  { %244 = vmatpush.bf16.msra.mxu1 %v465_v7 }
  0x22   :  { %326 = vmatpush.bf16.msra.mxu2 %v474_v20 }
  0x24   :  { %162 = vmatpush.bf16.msra.mxu0 %v456_v8 }
  0x25   :  { %245 = vmatpush.bf16.msra.mxu1 %v464_v9 }
  0x26   :  { %327 = vmatpush.bf16.msra.mxu2 %v473_v21 }
  0x28   :  { %163 = vmatpush.bf16.msra.mxu0 %v455_v10 }
  0x29   :  { %246 = vmatpush.bf16.msra.mxu1 %v463_v11 }
  0x2a   :  { %328 = vmatpush.bf16.msra.mxu2 %v472_v22 }
  0x2c   :  { %164 = vmatpush.bf16.msra.mxu0 %v454_v12 }
  0x2d   :  { %247 = vmatpush.bf16.msra.mxu1 %v462_v16 }
  0x2e   :  { %329 = vmatpush.bf16.msra.mxu2 %v471_v23 }
  0x30   :  { %165 = vmatpush.bf16.msra.mxu0 %v453_v13 }
  0x31   :  { %248 = vmatpush.bf16.msra.mxu1 %v461_v17 }
  0x32   :  { %330 = vmatpush.bf16.msra.mxu2 %v470_v30 }
  0x33   :  { %166 = vmatmul.bf16.vlgmr.msra.gmra.mxu0 %v89_v15 }
  0x36   :  { %331 = vmatpush.bf16.msra.mxu2 %v469_v31 }
  0xb0   :  { %v167_v25 = vpop.f32.mrf.mxu0 }
  0xb1   :  { %v168_v26 = vadd.f32 %v484_v24, %v167_v25 }
  0xb3   :  { %v171_v27 = vmax.f32 %v168_v26, 0.0 }
  0xb5   :  { %v172_v28 = vpack.c.bf16 %v171_v27, %v171_v27 }
  0xb7   :  { %249 = vmatmul.bf16.vlgmr.msra.gmra.mxu1 %v172_v28 }
  0xb8   :  { %v169_v29 = vpop.f32.mrf.mxu0 }
 0x134   :  { %v250_v33 = vpop.f32.mrf.mxu1 }
 0x135   :  { %v251_v34 = vadd.f32 %v485_v32, %v250_v33 }
 0x137   :  { %v254_v35 = vmax.f32 %v251_v34, 0.0 }
 0x139   :  { %v255_v36 = vpack.c.bf16 %v254_v35, %v254_v35 }
 0x13b   :  { %332 = vmatmul.bf16.vlgmr.msra.gmra.mxu2 %v255_v36 }
 0x13c   :  { %v252_v37 = vpop.f32.mrf.mxu1 }
 0x1be   :  { %v333_v39 = vpop.f32.mrf.mxu2 }
 0x1bf   :  { %v334_v40 = vadd.f32 %v486_v38, %v333_v39 }
 0x1c1   :  { %337 = vst [vmem:[#allocation10] sm:$0xff] %v334_v40 }
 0x1c2   :  { %348 = dma.vmem_to_hbm [thread:$0]  %s344_s25, 128, %s346_s28, [#allocation4]  }
 0x1c6   :  { %v335_v41 = vpop.f32.mrf.mxu2 }
 0x1c7   :  { %613 = dma.done.wait [#allocation4], 128  }
 0x1c8   :  { %614 = vsyncadd [#allocation4], 4294967168 }
 0x1c9   :  { %353 = vsyncpa [#allocation3], 1 }
 0x1ca   :  { %354 = vsyncpa [#allocation6], 1 }
 0x1cb   :  { %355 = vsyncpa [#allocation9], 1 }
 0x1cc   :  { %356 = vsyncpa [#allocation4], 1 }

</bundles_post_ra>
